<compile_context>
chip_gen: v6e
topology: v6e:2x2x1
jax: 0.10.0
libtpu: 0.0.40
codegen_flags: <defaults>
</compile_context>

<pallas_src>
import functools

import jax
import jax.numpy as jnp
from jax import lax
from jax.experimental import pallas as pl
from jax.experimental.pallas import tpu as pltpu

# ----------------------------- model config ---------------------------------
DIM = 32                       # model dim
HEADS = 4
DIM_HEAD = 8
INNER = HEADS * DIM_HEAD       # 32  (project_out=True since heads != 1)
SCALE = DIM_HEAD ** (-0.5)
LN_EPS = 1e-5                  # torch.nn.LayerNorm default

BATCH = 2
SEQ = 8


# ----------------------------- kernel ----------------------------------------


def _attn_kernel(x_ref, params_ref, wqkv_ref, wo_ref, o_ref, *,
                 batch, seq, heads, dim_head, inner, scale):
    bn = batch * seq

    x = x_ref[...].astype(jnp.float32)                        # (BN, D)
    p = params_ref[...].astype(jnp.float32)                   # (3, D)
    gamma, beta, b_out = p[0:1, :], p[1:2, :], p[2:3, :]

    # LayerNorm in f32 (elementwise math stays f32 on all generations).
    mu = jnp.mean(x, axis=-1, keepdims=True)
    xc = x - mu
    var = jnp.mean(xc * xc, axis=-1, keepdims=True)
    xn = xc * lax.rsqrt(var + LN_EPS) * gamma + beta           # (BN, D)

    # One fused QKV matmul — bf16 MXU inputs, f32 accumulation.
    qkv = jnp.dot(xn.astype(jnp.bfloat16),
                  wqkv_ref[...].astype(jnp.bfloat16),
                  preferred_element_type=jnp.float32)          # (BN, 3*inner)

    # Gather per-head blocks and stack along the LEADING axis so every
    # (batch, head) problem is one batch entry of two batched dot_generals.
    q_hs, k_hs, v_hs = [], [], []
    for h in range(heads):                                     # static unroll (4)
        lo = h * dim_head
        q_hs.append(qkv[:, lo:lo + dim_head]
                    .reshape(batch, seq, dim_head))
        k_hs.append(qkv[:, inner + lo:inner + lo + dim_head]
                    .reshape(batch, seq, dim_head))
        v_hs.append(qkv[:, 2 * inner + lo:2 * inner + lo + dim_head]
                    .reshape(batch, seq, dim_head))
    q_all = jnp.concatenate(q_hs, axis=0)                      # (H*B, N, dh)
    k_all = jnp.concatenate(k_hs, axis=0)                      # (H*B, N, dh)
    v_all = jnp.concatenate(v_hs, axis=0)                      # (H*B, N, dh)

    # Scores for ALL heads/batches in one batched MXU contraction; the k
    # "transpose" is the contraction choice, not an XLU transpose.
    dots = lax.dot_general(q_all.astype(jnp.bfloat16),
                           k_all.astype(jnp.bfloat16),
                           (((2,), (2,)), ((0,), (0,))),
                           preferred_element_type=jnp.float32) * scale  # (HB,N,N)

    # Numerically-stable softmax, normalization deferred past attn@v.
    m = jnp.max(dots, axis=-1, keepdims=True)
    e = jnp.exp(dots - m)                                      # (HB, N, N) f32
    denom = jnp.sum(e, axis=-1, keepdims=True)                 # (HB, N, 1)

    o_un = lax.dot_general(e.astype(jnp.bfloat16),
                           v_all.astype(jnp.bfloat16),
                           (((2,), (1,)), ((0,), (0,))),
                           preferred_element_type=jnp.float32)           # (HB,N,dh)

    # Single deferred normalization: one EUP reciprocal + one broadcast mul.
    o = o_un * pl.reciprocal(denom, approx=True)

    # 'b h n d -> b n (h d)': per-head leading-axis slices + one lane concat.
    head_outs = [o[h * batch:(h + 1) * batch].reshape(bn, dim_head)
                 for h in range(heads)]
    out_all = jnp.concatenate(head_outs, axis=-1)              # (BN, inner)

    # Output projection (bias added once at the end).
    y = jnp.dot(out_all.astype(jnp.bfloat16),
                wo_ref[...].astype(jnp.bfloat16),
                preferred_element_type=jnp.float32) + b_out    # (BN, D)

    o_ref[...] = y.astype(o_ref.dtype)


# ----------------------------- wrapper ---------------------------------------


@jax.jit
def attention_forward(x, ln_gamma, ln_beta, w_qkv, w_out, b_out):
    B, N, D = x.shape
    kernel = functools.partial(_attn_kernel, batch=B, seq=N, heads=HEADS,
                               dim_head=DIM_HEAD, inner=INNER, scale=SCALE)

    # Pack the three (1, D) vectors into one (3, D) buffer -> 4 kernel inputs
    # instead of 6 (fewer per-input DMA descriptor / semaphore-wait overheads).
    params = jnp.concatenate([ln_gamma, ln_beta, b_out], axis=0)    # (3, D)

    flops = (2 * B * N * D * 3 * INNER                 # qkv projection
             + 2 * 2 * B * HEADS * N * N * DIM_HEAD    # scores + attn@v
             + 2 * B * N * INNER * D)                  # output projection
    transcendentals = B * HEADS * N * N + B * HEADS * N + B * N
    bytes_accessed = 4 * (2 * B * N * D + 3 * D + D * 3 * INNER + INNER * D)

    vmem_spec = pl.BlockSpec(memory_space=pltpu.MemorySpace.VMEM)

    y = pl.pallas_call(
        kernel,
        out_shape=jax.ShapeDtypeStruct((B * N, D), x.dtype),
        in_specs=[vmem_spec] * 4,
        out_specs=vmem_spec,
        cost_estimate=pl.CostEstimate(flops=flops,
                                      transcendentals=transcendentals,
                                      bytes_accessed=bytes_accessed),
    )(x.reshape(B * N, D), params, w_qkv, w_out)

    return y.reshape(B, N, D)


# ----------------------------- pure-JAX reference -----------------------------


def attention_ref(x, ln_gamma, ln_beta, w_qkv, w_out, b_out):
    with jax.default_matmul_precision("highest"):
        mu = jnp.mean(x, axis=-1, keepdims=True)
        var = jnp.mean((x - mu) ** 2, axis=-1, keepdims=True)
        xn = (x - mu) / jnp.sqrt(var + LN_EPS) * ln_gamma + ln_beta
        qkv = jnp.einsum("bnd,de->bne", xn, w_qkv)
        q, k, v = jnp.split(qkv, 3, axis=-1)

        def split_heads(t):
            b, n, _ = t.shape
            return t.reshape(b, n, HEADS, DIM_HEAD).transpose(0, 2, 1, 3)

        q, k, v = split_heads(q), split_heads(k), split_heads(v)
        dots = jnp.einsum("bhnd,bhmd->bhnm", q, k) * SCALE
        attn = jax.nn.softmax(dots, axis=-1)
        out = jnp.einsum("bhnm,bhmd->bhnd", attn, v)
        out = out.transpose(0, 2, 1, 3).reshape(x.shape[0], x.shape[1], INNER)
        return jnp.einsum("bni,id->bnd", out, w_out) + b_out


# ----------------------------- main -------------------------------------------

if __name__ == "__main__":
    key = jax.random.PRNGKey(0)
    k0, k1, k2, k3, k4, k5 = jax.random.split(key, 6)

    x = jax.random.normal(k0, (BATCH, SEQ, DIM), jnp.float32)
    ln_gamma = 1.0 + 0.1 * jax.random.normal(k1, (1, DIM), jnp.float32)
    ln_beta = 0.1 * jax.random.normal(k2, (1, DIM), jnp.float32)
    w_qkv = 0.1 * jax.random.normal(k3, (DIM, 3 * INNER), jnp.float32)
    w_out = 0.1 * jax.random.normal(k4, (INNER, DIM), jnp.float32)
    b_out = 0.01 * jax.random.normal(k5, (1, DIM), jnp.float32)

    out = attention_forward(x, ln_gamma, ln_beta, w_qkv, w_out, b_out)
    out = jax.block_until_ready(out)

    assert out.shape == (BATCH, SEQ, DIM)
    assert bool(jnp.all(jnp.isfinite(out)))

    ref = attention_ref(x, ln_gamma, ln_beta, w_qkv, w_out, b_out)
    max_err = float(jnp.max(jnp.abs(out - ref)))
    # Tolerance accounts for bf16 MXU operands (f32 accumulation) and the
    # approximate EUP reciprocal vs. the full-f32 reference.
    assert max_err < 5e-2, f"kernel/reference mismatch: max abs err = {max_err}"

    print("KERNEL_OK")
</pallas_src>

<mosaic_0001>
module attributes {stable_mosaic.version = 11 : i64} {
  func.func @_attn_kernel(%arg0: memref<16x32xf32, #tpu.memory_space<vmem>>, %arg1: memref<3x32xf32, #tpu.memory_space<vmem>>, %arg2: memref<32x96xf32, #tpu.memory_space<vmem>>, %arg3: memref<32x32xf32, #tpu.memory_space<vmem>>, %arg4: memref<16x32xf32, #tpu.memory_space<vmem>>) attributes {dimension_semantics = [], scalar_prefetch = 0 : i64, scratch_operands = 0 : i64, tpu.core_type = #tpu.core_type<tc>} {
    %c0 = arith.constant 0 : index
    %c0_0 = arith.constant 0 : index
    %0 = vector.load %arg0[%c0, %c0_0] : memref<16x32xf32, #tpu.memory_space<vmem>>, vector<16x32xf32>
    %c0_1 = arith.constant 0 : index
    %c0_2 = arith.constant 0 : index
    %1 = vector.load %arg1[%c0_1, %c0_2] : memref<3x32xf32, #tpu.memory_space<vmem>>, vector<3x32xf32>
    %2 = vector.extract_strided_slice %1 {offsets = [0, 0], sizes = [1, 32], strides = [1, 1]} : vector<3x32xf32> to vector<1x32xf32>
    %3 = vector.extract_strided_slice %1 {offsets = [1, 0], sizes = [1, 32], strides = [1, 1]} : vector<3x32xf32> to vector<1x32xf32>
    %4 = vector.extract_strided_slice %1 {offsets = [2, 0], sizes = [1, 32], strides = [1, 1]} : vector<3x32xf32> to vector<1x32xf32>
    %cst = arith.constant dense<0.000000e+00> : vector<16xf32>
    %5 = vector.multi_reduction <add>, %0, %cst [1] : vector<16x32xf32> to vector<16xf32>
    %6 = vector.shape_cast %5 : vector<16xf32> to vector<16x1xf32>
    %cst_3 = arith.constant 3.200000e+01 : f32
    %7 = vector.broadcast %cst_3 : f32 to vector<16x1xf32>
    %8 = arith.divf %6, %7 : vector<16x1xf32>
    %9 = vector.broadcast %8 : vector<16x1xf32> to vector<16x32xf32>
    %10 = arith.subf %0, %9 : vector<16x32xf32>
    %11 = arith.mulf %10, %10 : vector<16x32xf32>
    %cst_4 = arith.constant dense<0.000000e+00> : vector<16xf32>
    %12 = vector.multi_reduction <add>, %11, %cst_4 [1] : vector<16x32xf32> to vector<16xf32>
    %13 = vector.shape_cast %12 : vector<16xf32> to vector<16x1xf32>
    %cst_5 = arith.constant 3.200000e+01 : f32
    %14 = vector.broadcast %cst_5 : f32 to vector<16x1xf32>
    %15 = arith.divf %13, %14 : vector<16x1xf32>
    %cst_6 = arith.constant 9.99999974E-6 : f32
    %16 = vector.broadcast %cst_6 : f32 to vector<16x1xf32>
    %17 = arith.addf %15, %16 : vector<16x1xf32>
    %18 = math.rsqrt %17 : vector<16x1xf32>
    %19 = vector.broadcast %18 : vector<16x1xf32> to vector<16x32xf32>
    %20 = arith.mulf %10, %19 : vector<16x32xf32>
    %21 = vector.broadcast %2 : vector<1x32xf32> to vector<16x32xf32>
    %22 = arith.mulf %20, %21 : vector<16x32xf32>
    %23 = vector.broadcast %3 : vector<1x32xf32> to vector<16x32xf32>
    %24 = arith.addf %22, %23 : vector<16x32xf32>
    %25 = arith.truncf %24 : vector<16x32xf32> to vector<16x32xbf16>
    %c0_7 = arith.constant 0 : index
    %c0_8 = arith.constant 0 : index
    %26 = vector.load %arg2[%c0_7, %c0_8] : memref<32x96xf32, #tpu.memory_space<vmem>>, vector<32x96xf32>
    %27 = arith.truncf %26 : vector<32x96xf32> to vector<32x96xbf16>
    %cst_9 = arith.constant dense<0.000000e+00> : vector<16x96xf32>
    %28 = tpu.matmul %25, %27, %cst_9 {dimension_numbers = #tpu.dot_dimension_numbers<[1], [0], [0], [1], [0, 0, 1, 1], [], []>} : vector<16x32xbf16>, vector<32x96xbf16>, vector<16x96xf32> -> vector<16x96xf32>
    %29 = vector.extract_strided_slice %28 {offsets = [0, 0], sizes = [16, 8], strides = [1, 1]} : vector<16x96xf32> to vector<16x8xf32>
    %30 = vector.shape_cast %29 : vector<16x8xf32> to vector<2x8x8xf32>
    %31 = vector.extract_strided_slice %28 {offsets = [0, 32], sizes = [16, 8], strides = [1, 1]} : vector<16x96xf32> to vector<16x8xf32>
    %32 = vector.shape_cast %31 : vector<16x8xf32> to vector<2x8x8xf32>
    %33 = vector.extract_strided_slice %28 {offsets = [0, 64], sizes = [16, 8], strides = [1, 1]} : vector<16x96xf32> to vector<16x8xf32>
    %34 = vector.shape_cast %33 : vector<16x8xf32> to vector<2x8x8xf32>
    %35 = vector.extract_strided_slice %28 {offsets = [0, 8], sizes = [16, 8], strides = [1, 1]} : vector<16x96xf32> to vector<16x8xf32>
    %36 = vector.shape_cast %35 : vector<16x8xf32> to vector<2x8x8xf32>
    %37 = vector.extract_strided_slice %28 {offsets = [0, 40], sizes = [16, 8], strides = [1, 1]} : vector<16x96xf32> to vector<16x8xf32>
    %38 = vector.shape_cast %37 : vector<16x8xf32> to vector<2x8x8xf32>
    %39 = vector.extract_strided_slice %28 {offsets = [0, 72], sizes = [16, 8], strides = [1, 1]} : vector<16x96xf32> to vector<16x8xf32>
    %40 = vector.shape_cast %39 : vector<16x8xf32> to vector<2x8x8xf32>
    %41 = vector.extract_strided_slice %28 {offsets = [0, 16], sizes = [16, 8], strides = [1, 1]} : vector<16x96xf32> to vector<16x8xf32>
    %42 = vector.shape_cast %41 : vector<16x8xf32> to vector<2x8x8xf32>
    %43 = vector.extract_strided_slice %28 {offsets = [0, 48], sizes = [16, 8], strides = [1, 1]} : vector<16x96xf32> to vector<16x8xf32>
    %44 = vector.shape_cast %43 : vector<16x8xf32> to vector<2x8x8xf32>
    %45 = vector.extract_strided_slice %28 {offsets = [0, 80], sizes = [16, 8], strides = [1, 1]} : vector<16x96xf32> to vector<16x8xf32>
    %46 = vector.shape_cast %45 : vector<16x8xf32> to vector<2x8x8xf32>
    %47 = vector.extract_strided_slice %28 {offsets = [0, 24], sizes = [16, 8], strides = [1, 1]} : vector<16x96xf32> to vector<16x8xf32>
    %48 = vector.shape_cast %47 : vector<16x8xf32> to vector<2x8x8xf32>
    %49 = vector.extract_strided_slice %28 {offsets = [0, 56], sizes = [16, 8], strides = [1, 1]} : vector<16x96xf32> to vector<16x8xf32>
    %50 = vector.shape_cast %49 : vector<16x8xf32> to vector<2x8x8xf32>
    %51 = vector.extract_strided_slice %28 {offsets = [0, 88], sizes = [16, 8], strides = [1, 1]} : vector<16x96xf32> to vector<16x8xf32>
    %52 = vector.shape_cast %51 : vector<16x8xf32> to vector<2x8x8xf32>
    %53 = tpu.concatenate %30, %36, %42, %48 in 0 : vector<2x8x8xf32>, vector<2x8x8xf32>, vector<2x8x8xf32>, vector<2x8x8xf32> -> vector<8x8x8xf32>
    %54 = tpu.concatenate %32, %38, %44, %50 in 0 : vector<2x8x8xf32>, vector<2x8x8xf32>, vector<2x8x8xf32>, vector<2x8x8xf32> -> vector<8x8x8xf32>
    %55 = tpu.concatenate %34, %40, %46, %52 in 0 : vector<2x8x8xf32>, vector<2x8x8xf32>, vector<2x8x8xf32>, vector<2x8x8xf32> -> vector<8x8x8xf32>
    %56 = arith.truncf %53 : vector<8x8x8xf32> to vector<8x8x8xbf16>
    %57 = arith.truncf %54 : vector<8x8x8xf32> to vector<8x8x8xbf16>
    %cst_10 = arith.constant dense<0.000000e+00> : vector<8x8x8xf32>
    %58 = tpu.matmul %56, %57, %cst_10 {dimension_numbers = #tpu.dot_dimension_numbers<[2], [2], [1], [1], [0, 0, 0, 1, 1, 1], [0], [0]>} : vector<8x8x8xbf16>, vector<8x8x8xbf16>, vector<8x8x8xf32> -> vector<8x8x8xf32>
    %cst_11 = arith.constant 0.353553385 : f32
    %59 = vector.broadcast %cst_11 : f32 to vector<8x8x8xf32>
    %60 = arith.mulf %58, %59 : vector<8x8x8xf32>
    %cst_12 = arith.constant dense<0xFF800000> : vector<8x8xf32>
    %61 = vector.multi_reduction <maximumf>, %60, %cst_12 [2] : vector<8x8x8xf32> to vector<8x8xf32>
    %62 = vector.shape_cast %61 : vector<8x8xf32> to vector<8x8x1xf32>
    %63 = vector.broadcast %62 : vector<8x8x1xf32> to vector<8x8x8xf32>
    %64 = arith.subf %60, %63 : vector<8x8x8xf32>
    %65 = math.exp %64 : vector<8x8x8xf32>
    %cst_13 = arith.constant dense<0.000000e+00> : vector<8x8xf32>
    %66 = vector.multi_reduction <add>, %65, %cst_13 [2] : vector<8x8x8xf32> to vector<8x8xf32>
    %67 = vector.shape_cast %66 : vector<8x8xf32> to vector<8x8x1xf32>
    %68 = arith.truncf %65 : vector<8x8x8xf32> to vector<8x8x8xbf16>
    %69 = arith.truncf %55 : vector<8x8x8xf32> to vector<8x8x8xbf16>
    %cst_14 = arith.constant dense<0.000000e+00> : vector<8x8x8xf32>
    %70 = tpu.matmul %68, %69, %cst_14 {dimension_numbers = #tpu.dot_dimension_numbers<[2], [1], [1], [2], [0, 0, 0, 1, 1, 2], [0], [0]>} : vector<8x8x8xbf16>, vector<8x8x8xbf16>, vector<8x8x8xf32> -> vector<8x8x8xf32>
    %71 = tpu.reciprocal %67 {approx = true} : vector<8x8x1xf32> -> vector<8x8x1xf32>
    %72 = vector.broadcast %71 : vector<8x8x1xf32> to vector<8x8x8xf32>
    %73 = arith.mulf %70, %72 : vector<8x8x8xf32>
    %74 = vector.extract_strided_slice %73 {offsets = [0, 0, 0], sizes = [2, 8, 8], strides = [1, 1, 1]} : vector<8x8x8xf32> to vector<2x8x8xf32>
    %75 = vector.shape_cast %74 : vector<2x8x8xf32> to vector<16x8xf32>
    %76 = vector.extract_strided_slice %73 {offsets = [2, 0, 0], sizes = [2, 8, 8], strides = [1, 1, 1]} : vector<8x8x8xf32> to vector<2x8x8xf32>
    %77 = vector.shape_cast %76 : vector<2x8x8xf32> to vector<16x8xf32>
    %78 = vector.extract_strided_slice %73 {offsets = [4, 0, 0], sizes = [2, 8, 8], strides = [1, 1, 1]} : vector<8x8x8xf32> to vector<2x8x8xf32>
    %79 = vector.shape_cast %78 : vector<2x8x8xf32> to vector<16x8xf32>
    %80 = vector.extract_strided_slice %73 {offsets = [6, 0, 0], sizes = [2, 8, 8], strides = [1, 1, 1]} : vector<8x8x8xf32> to vector<2x8x8xf32>
    %81 = vector.shape_cast %80 : vector<2x8x8xf32> to vector<16x8xf32>
    %82 = tpu.concatenate %75, %77, %79, %81 in 1 : vector<16x8xf32>, vector<16x8xf32>, vector<16x8xf32>, vector<16x8xf32> -> vector<16x32xf32>
    %83 = arith.truncf %82 : vector<16x32xf32> to vector<16x32xbf16>
    %c0_15 = arith.constant 0 : index
    %c0_16 = arith.constant 0 : index
    %84 = vector.load %arg3[%c0_15, %c0_16] : memref<32x32xf32, #tpu.memory_space<vmem>>, vector<32x32xf32>
    %85 = arith.truncf %84 : vector<32x32xf32> to vector<32x32xbf16>
    %cst_17 = arith.constant dense<0.000000e+00> : vector<16x32xf32>
    %86 = tpu.matmul %83, %85, %cst_17 {dimension_numbers = #tpu.dot_dimension_numbers<[1], [0], [0], [1], [0, 0, 1, 1], [], []>} : vector<16x32xbf16>, vector<32x32xbf16>, vector<16x32xf32> -> vector<16x32xf32>
    %87 = vector.broadcast %4 : vector<1x32xf32> to vector<16x32xf32>
    %88 = arith.addf %86, %87 : vector<16x32xf32>
    %c0_18 = arith.constant 0 : index
    %c0_19 = arith.constant 0 : index
    %89 = vector.load %arg4[%c0_18, %c0_19] : memref<16x32xf32, #tpu.memory_space<vmem>>, vector<16x32xf32>
    tpu.vector_store %arg4[%c0_18, %c0_19], %88 {strides = array<i32>} : memref<16x32xf32, #tpu.memory_space<vmem>>, vector<16x32xf32>,
    return
  }
}

</mosaic_0001>

<bundles_post_ra>
// kernel: attention_forward.1
= control target key start
LH: loop header
LB: loop body
LE: loop exit
PB: predicated region body
PF: predicated region fallthrough
CT: control target
= control target key end

     0   :  { %9 = vsyncpa [#allocation3], 0  ;;  %s1770_s0 = inlined_call_operand.hbm [shape: f32[16,32], index: 0, kind: input, shape index: {}]   ;;  %s1771_s1 = inlined_call_operand.vmem [shape: f32[3,32], index: 1, kind: input, shape index: {}]   ;;  %s1772_s2 = inlined_call_operand.hbm [shape: f32[32,96], index: 2, kind: input, shape index: {}]   ;;  %s1773_s3 = inlined_call_operand.hbm [shape: f32[32,32], index: 3, kind: input, shape index: {}]   ;;  %s1774_s4 = inlined_call_operand.hbm [shape: f32[16,32], index: 4, kind: output, shape index: {}]  }
   0x1   :  { %10 = vsyncpa [#allocation6], 0 }
   0x2   :  { %11 = vsyncpa [#allocation4], 0  ;;  %s1506_s15 = smov [#allocation5]   ;;  %s1507_s17 = smov [#allocation2]  }
   0x3   :  { %s31_s16 = sshll.u32 %s1506_s15, 4  ;;  %s17_s18 = sshll.u32 %s1507_s17, 4  ;;  %s32_s16 = int_to_ptr.vmem [resolvable:$true] %s31_s16  ;;  %s18_s18 = int_to_ptr.vmem [resolvable:$true] %s17_s18 }
   0x4   :  { %s1428_s19 = scalar_lea.vmem %s32_s16, 512  ;;  %p1433_p1 = scmp.lt.s32.totalorder %s32_s16, %s32_s16 }
   0x5   :  { %p1429_p0 = scmp.ne.s32.totalorder %s32_s16, %s1428_s19  ;;  %p1434_p2 = scmp.lt.s32.totalorder %s1428_s19, %s1428_s19 }
   0x7   :  { %p1435_p3 = por %p1434_p2, %p1433_p1 }
   0x9   :  { %p1436_p4 = pnand %p1435_p3, %p1429_p0 }
   0xb   :  { %1439 = shalt.err (!%p1436_p4)
}
   0xc   :  { %s1508_s20 = smov 128   ;;  %s1509_s21 = smov 8  }
   0xd   :  { %37 = dma.hbm_to_vmem [thread:$0]  %s1772_s2, 512, %s32_s16, [#allocation6], %s1508_s20, %s1508_s20, %s1509_s21  }
   0xe   :  { %s1448_s24 = scalar_lea.vmem %s18_s18, 256  ;;  %p1453_p6 = scmp.lt.s32.totalorder %s18_s18, %s18_s18 }
   0xf   :  { %p1449_p5 = scmp.ne.s32.totalorder %s18_s18, %s1448_s24  ;;  %p1454_p7 = scmp.lt.s32.totalorder %s1448_s24, %s1448_s24 }
  0x11   :  { %p1455_p8 = por %p1454_p7, %p1453_p6 }
  0x13   :  { %p1456_p9 = pnand %p1455_p8, %p1449_p5 }
  0x15   :  { %1459 = shalt.err (!%p1456_p9)
}
  0x16   :  { %23 = dma.hbm_to_vmem [thread:$0]  %s1770_s0, 256, %s18_s18, [#allocation3], %s1508_s20, %s1508_s20, %s1509_s21  }
  0x17   :  { %s1510_s27 = smov [#allocation7]  }
  0x18   :  { %s43_s28 = sshll.u32 %s1510_s27, 4  ;;  %s44_s28 = int_to_ptr.vmem [resolvable:$true] %s43_s28 }
  0x19   :  { %s1468_s29 = scalar_lea.vmem %s44_s28, 512  ;;  %p1473_p11 = scmp.lt.s32.totalorder %s44_s28, %s44_s28 }
  0x1a   :  { %p1469_p10 = scmp.ne.s32.totalorder %s44_s28, %s1468_s29  ;;  %p1474_p12 = scmp.lt.s32.totalorder %s1468_s29, %s1468_s29 }
  0x1c   :  { %p1475_p13 = por %p1474_p12, %p1473_p11 }
  0x1e   :  { %p1476_p0 = pnand %p1475_p13, %p1469_p10 }
  0x20   :  { %1479 = shalt.err (!%p1476_p0)
}
  0x21   :  { %49 = dma.hbm_to_vmem [thread:$0]  %s1773_s3, 512, %s44_s28, [#allocation6], %s1508_s20, %s1508_s20, %s1509_s21  }
  0x22   :  { %1500 = dma.done.wait [#allocation3], 256  }
  0x23   :  { %1501 = vsyncadd [#allocation3], 4294967040 }
  0x24   :  { %1502 = dma.done.wait [#allocation6], 1024  }
  0x25   :  { %1503 = vsyncadd [#allocation6], 4294966272  ;;  %vm63_vm0 = vcmask 261120   ;;  %v60_v0 = vld [vmem:[#allocation2] sm:$0xff]  ;;  %v61_v1 = vld [vmem:[#allocation2 + $0x8] sm:$0xff]  ;;  %v1511_v17 = vmov 0.0   ;;  %v91_v27 = vlaneseq }
  0x26   :  { %v64_v2 = vsel %vm63_vm0, %v60_v0, 0.0  ;;  %v67_v3 = vsel %vm63_vm0, %v61_v1, 0.0  ;;  %v106_v14 = vld [vmem:[#allocation5 + $0x10] sm:$0xff]  ;;  %v107_v15 = vld [vmem:[#allocation5 + $0x18] sm:$0xff]  ;;  %v104_v16 = vld [vmem:[#allocation5] sm:$0xff]  ;;  %1227 = vmatprep.subr.bf16.mxu0 %v1511_v17  ;;  %vm1512_vm1 = vmmov 0   ;;  %1235 = vmatprep.subr.bf16.mxu1 %v1511_v17 }
  0x27   :  { %65 = vadd.xlane.f32.xlu0 %v64_v2  ;;  %v109_v18 = vpack.c.bf16 %v107_v15, %v106_v14  ;;  %v105_v19 = vld [vmem:[#allocation5 + $0x8] sm:$0xff]  ;;  %1231 = vmatprep.mubr.msk.bf16.mxu0 %vm1512_vm1, %v1511_v17  ;;  %v1576_v28 = vshrl.u32 %v91_v27, 7  ;;  %v1582_v30 = vld [vmem:[%s1771_s1] sm:$0x7]  ;;  %s1513_s1 = smov 112   ;;  %s1514_s5 = smov 120  }
  0x28   :  { %1237 = vmatprep.mubr.msk.bf16.mxu1 %vm1512_vm1, %v1511_v17  ;;  %v108_v20 = vpack.c.bf16 %v105_v19, %v104_v16  ;;  %s1515_s6 = smov 104   ;;  %s1516_s7 = smov 96   ;;  %vm185_vm2 = vcmask 64512   ;;  %vm668_vm3 = vcmask 1043456   ;;  %vm1090_vm4 = vcmask 130048  }
  0x29   :  { %1228 = vmatpush3.bf16.msra.mxu0 %v109_v18  ;;  %v93_v29 = vsub.s32 0, %v1576_v28  ;;  %v99_v34 = vsub.s32 1, %v1576_v28  ;;  %s1517_s8 = smov 64   ;;  %s1518_s9 = smov 16   ;;  %vm1093_vm5 = vcmask 195584  }
  0x2a   :  { %1229 = vmatprep.subr.bf16.mxu0 %v1511_v17  ;;  %s1519_s10 = smov 24   ;;  %s1520_s11 = smov [#allocation8]  }
  0x2b   :  { %68 = vadd.xlane.f32.xlu0 %v67_v3  ;;  %v94_v33 = vrot.slane %v1582_v30, %v93_v29  ;;  %v100_v38 = vrot.slane %v1582_v30, %v99_v34  ;;  %s1158_s12 = sshll.u32 %s1520_s11, 4  ;;  %s1159_s12 = int_to_ptr.vmem [resolvable:$true] %s1158_s12 }
  0x2c   :  { %s1480_s13 = scalar_lea.vmem %s1159_s12, 256  ;;  %p1485_p2 = scmp.lt.s32.totalorder %s1159_s12, %s1159_s12 }
  0x2d   :  { %1230 = vmatpush3.bf16.msra.mxu0 %v108_v20  ;;  %p1481_p1 = scmp.ne.s32.totalorder %s1159_s12, %s1480_s13  ;;  %p1486_p3 = scmp.lt.s32.totalorder %s1480_s13, %s1480_s13 }
  0x2e   :  { %1241 = vmatprep.subr.bf16.mxu0 %v1511_v17 }
  0x2f   :  { %p1487_p4 = por %p1486_p3, %p1485_p2 }
  0x31   :  { %p1488_p5 = pnand %p1487_p4, %p1481_p1 }
  0xb0   :  { %v66_v4 = vpop.xlane.xlu0 %65 }
  0xb1   :  { %v71_v5 = vmul.f32 0.03125, %v66_v4 }
  0xb3   :  { %v73_v6 = vsub.f32 %v60_v0, %v71_v5 }
  0xb4   :  { %v69_v7 = vpop.xlane.xlu0 %68 }
  0xb5   :  { %v72_v8 = vmul.f32 0.03125, %v69_v7  ;;  %v75_v9 = vmul.f32 %v73_v6, %v73_v6 }
  0xb7   :  { %v74_v10 = vsub.f32 %v61_v1, %v72_v8  ;;  %v77_v11 = vsel %vm63_vm0, %v75_v9, 0.0 }
  0xb8   :  { %78 = vadd.xlane.f32.xlu1 %v77_v11 }
  0xb9   :  { %v76_v12 = vmul.f32 %v74_v10, %v74_v10 }
  0xbb   :  { %v80_v13 = vsel %vm63_vm0, %v76_v12, 0.0 }
  0xbc   :  { %81 = vadd.xlane.f32.xlu1 %v80_v13 }
 0x141   :  { %v79_v21 = vpop.xlane.xlu1 %78 }
 0x142   :  { %v83_v22 = vmul.f32 0.03125, %v79_v21 }
 0x144   :  { %v85_v23 = vadd.f32 1e-05, %v83_v22 }
 0x145   :  { %v82_v24 = vpop.xlane.xlu1 %81 }
 0x146   :  { %1384 = vrsqrt.f32 %v85_v23  ;;  %v84_v25 = vmul.f32 0.03125, %v82_v24 }
 0x148   :  { %v86_v26 = vadd.f32 1e-05, %v84_v25 }
 0x14a   :  { %1386 = vrsqrt.f32 %v86_v26 }
 0x153   :  { %v1385_v31 = vpop.eup %1384 }
 0x154   :  { %v89_v32 = vmul.f32 %v1385_v31, %v73_v6 }
 0x156   :  { %v95_v37 = vmul.f32 %v94_v33, %v89_v32 }
 0x157   :  { %v1387_v35 = vpop.eup %1386 }
 0x158   :  { %v90_v36 = vmul.f32 %v1387_v35, %v74_v10  ;;  %v101_v40 = vadd.f32 %v100_v38, %v95_v37 }
 0x15a   :  { %v96_v39 = vmul.f32 %v94_v33, %v90_v36 }
 0x15c   :  { %v102_v41 = vadd.f32 %v100_v38, %v96_v39 }
 0x15e   :  { %v103_v42 = vpack.c.bf16 %v102_v41, %v101_v40 }
 0x160   :  { %1232 = vmatmul.mubr.msk.bf16.vlgmr.msra.gmra.mxu0 %vm63_vm0, %v103_v42 }
 0x161   :  { %1243 = vmatprep.mubr.msk.bf16.mxu0 %vm1512_vm1, %v1511_v17 }
 0x220   :  { %v147_v43 = vpop.f32.mrf.mxu0 }
 0x221   :  { %v174_v49 = vpack.c.bf16 %v147_v43, %v147_v43 }
 0x222   :  { %v1233_v44 = vpop.f32.mrf.mxu0 }
 0x224   :  { %v150_v45 = vpop.f32.mrf.mxu0 }
 0x225   :  { %v1359_v46 = vpack.i.bf16 %v150_v45, %v147_v43  ;;  %v175_v48 = vpack.c.bf16 %v150_v45, %v150_v45 }
 0x226   :  { %v1234_v47 = vpop.f32.mrf.mxu0 }
 0x227   :  { %1360 = vrot.lane.b32.xlu1 %v1359_v46, %s1513_s1  ;;  %1355 = vrot.lane.b32.xlu0 %v1359_v46, %s1514_s5 }
 0x22b   :  { %1365 = vrot.lane.b32.xlu1 %v1359_v46, %s1515_s6  ;;  %233 = vrot.lane.b32.xlu0 %v175_v48, %s1516_s7 }
 0x22f   :  { %183 = vrot.lane.b32.xlu1 %v174_v49, %s1516_s7 }
 0x299   :  { %v1361_v50 = vpop.permute.xlu1 %1360  ;;  %v1356_v51 = vpop.permute.xlu0 %1355 }
 0x29a   :  { %v1358_v52 = vunpack.i.h.bf16 %v1356_v51  ;;  %v1357_v53 = vunpack.i.l.bf16 %v1356_v51  ;;  %v1363_v54 = vunpack.i.h.bf16 %v1361_v50  ;;  %v1362_v55 = vunpack.i.l.bf16 %v1361_v50 }
 0x29c   :  { %v177_v56 = vpack.c.bf16 %v1358_v52, %v1358_v52  ;;  %v176_v57 = vpack.c.bf16 %v1357_v53, %v1357_v53  ;;  %v1595_v61 = vpack.c.bf16 %v1363_v54, %v1363_v54  ;;  %v1597_v62 = vpack.c.bf16 %v1362_v55, %v1362_v55 }
 0x29d   :  { %v1366_v58 = vpop.permute.xlu1 %1365  ;;  %v234_v59 = vpop.permute.xlu0 %233 }
 0x29e   :  { %v239_v60 = vsel %vm185_vm2, %v234_v59, 0  ;;  %282 = vrot.lane.b32.xlu1 %v176_v57, %s1516_s7  ;;  %331 = vrot.lane.b32.xlu0 %v177_v56, %s1516_s7  ;;  %v1368_v63 = vunpack.i.h.bf16 %v1366_v58  ;;  %v1367_v0 = vunpack.i.l.bf16 %v1366_v58 }
 0x29f   :  { %1242 = vmatpush3.bf16.xpose.msra.mxu0 %v239_v60 }
 0x2a0   :  { %1253 = vmatprep.subr.bf16.mxu0 %v1511_v17  ;;  %v1605_v3 = vpack.c.bf16 %v1368_v63, %v1368_v63  ;;  %v1607_v4 = vpack.c.bf16 %v1367_v0, %v1367_v0 }
 0x2a1   :  { %v184_v1 = vpop.permute.xlu1 %183 }
 0x2a2   :  { %380 = vrot.lane.b32.xlu1 %v1597_v62, %s1516_s7  ;;  %429 = vrot.lane.b32.xlu0 %v1595_v61, %s1516_s7  ;;  %v190_v2 = vsel %vm185_vm2, %v184_v1, 0 }
 0x2a3   :  { %1236 = vmatpush3.bf16.xpose.msra.mxu1 %v190_v2 }
 0x2a4   :  { %1247 = vmatprep.subr.bf16.mxu1 %v1511_v17 }
 0x2a6   :  { %478 = vrot.lane.b32.xlu1 %v1607_v4, %s1516_s7  ;;  %527 = vrot.lane.b32.xlu0 %v1605_v3, %s1516_s7 }
 0x2a7   :  { %1244 = vmatmul.mubr.msk.bf16.vlgmr.msra.gmra.mxu0 %vm185_vm2, %v175_v48 }
 0x2a8   :  { %1255 = vmatprep.mubr.msk.bf16.mxu0 %vm1512_vm1, %v1511_v17 }
 0x2aa   :  { %1238 = vmatmul.mubr.msk.bf16.vlgmr.msra.gmra.mxu1 %vm185_vm2, %v174_v49  ;;  %663 = vrot.lane.b32.xlu1 %v174_v49, %s1517_s8 }
 0x2ab   :  { %712 = vrot.lane.b32.xlu0 %v175_v48, %s1517_s8  ;;  %1249 = vmatprep.mubr.msk.bf16.mxu1 %vm1512_vm1, %v1511_v17 }
 0x2ae   :  { %760 = vrot.lane.b32.xlu1 %v176_v57, %s1517_s8 }
 0x2b2   :  { %808 = vrot.lane.b32.xlu1 %v177_v56, %s1517_s8 }
 0x310   :  { %v283_v5 = vpop.permute.xlu1 %282  ;;  %v332_v6 = vpop.permute.xlu0 %331 }
 0x311   :  { %v288_v7 = vsel %vm185_vm2, %v283_v5, 0  ;;  %v337_v8 = vsel %vm185_vm2, %v332_v6, 0 }
 0x312   :  { %1248 = vmatpush3.bf16.xpose.msra.mxu1 %v288_v7  ;;  %1254 = vmatpush3.bf16.xpose.msra.mxu0 %v337_v8 }
 0x313   :  { %1259 = vmatprep.subr.bf16.mxu1 %v1511_v17  ;;  %1265 = vmatprep.subr.bf16.mxu0 %v1511_v17 }
 0x314   :  { %v381_v9 = vpop.permute.xlu1 %380  ;;  %v430_v10 = vpop.permute.xlu0 %429 }
 0x315   :  { %v386_v11 = vsel %vm185_vm2, %v381_v9, 0  ;;  %v435_v12 = vsel %vm185_vm2, %v430_v10, 0 }
 0x318   :  { %v479_v13 = vpop.permute.xlu1 %478  ;;  %v528_v14 = vpop.permute.xlu0 %527 }
 0x319   :  { %1250 = vmatmul.mubr.msk.bf16.vlgmr.msra.gmra.mxu1 %vm185_vm2, %v176_v57  ;;  %1256 = vmatmul.mubr.msk.bf16.vlgmr.msra.gmra.mxu0 %vm185_vm2, %v177_v56  ;;  %v484_v15 = vsel %vm185_vm2, %v479_v13, 0  ;;  %v533_v16 = vsel %vm185_vm2, %v528_v14, 0 }
 0x31a   :  { %1260 = vmatpush3.bf16.xpose.msra.mxu1 %v386_v11  ;;  %1266 = vmatpush3.bf16.xpose.msra.mxu0 %v435_v12 }
 0x31b   :  { %1261 = vmatprep.mubr.msk.bf16.mxu1 %vm1512_vm1, %v1511_v17  ;;  %1267 = vmatprep.mubr.msk.bf16.mxu0 %vm1512_vm1, %v1511_v17 }
 0x31c   :  { %1271 = vmatprep.subr.bf16.mxu1 %v1511_v17  ;;  %1277 = vmatprep.subr.bf16.mxu0 %v1511_v17  ;;  %v664_v18 = vpop.permute.xlu1 %663 }
 0x31d   :  { %v713_v19 = vpop.permute.xlu0 %712  ;;  %v670_v20 = vsel %vm668_vm3, %v664_v18, 0 }
 0x31e   :  { %v718_v21 = vsel %vm668_vm3, %v713_v19, 0 }
 0x320   :  { %v761_v2 = vpop.permute.xlu1 %760 }
 0x321   :  { %1262 = vmatmul.mubr.msk.bf16.vlgmr.msra.gmra.mxu1 %vm185_vm2, %v1597_v62  ;;  %1268 = vmatmul.mubr.msk.bf16.vlgmr.msra.gmra.mxu0 %vm185_vm2, %v1595_v61 }
 0x322   :  { %1272 = vmatpush3.bf16.xpose.msra.mxu1 %v484_v15  ;;  %1278 = vmatpush3.bf16.xpose.msra.mxu0 %v533_v16 }
 0x323   :  { %1273 = vmatprep.mubr.msk.bf16.mxu1 %vm1512_vm1, %v1511_v17  ;;  %1279 = vmatprep.mubr.msk.bf16.mxu0 %vm1512_vm1, %v1511_v17 }
 0x324   :  { %1283 = vmatprep.subr.bf16.mxu1 %v1511_v17  ;;  %1289 = vmatprep.subr.bf16.mxu0 %v1511_v17  ;;  %v809_v10 = vpop.permute.xlu1 %808 }
 0x329   :  { %1274 = vmatmul.mubr.msk.bf16.vlgmr.msra.gmra.mxu1 %vm185_vm2, %v1607_v4  ;;  %1280 = vmatmul.mubr.msk.bf16.vlgmr.msra.gmra.mxu0 %vm185_vm2, %v1605_v3 }
 0x32a   :  { %1284 = vmatpush3.bf16.msra.mxu1 %v670_v20  ;;  %1290 = vmatpush3.bf16.msra.mxu0 %v718_v21  ;;  %v814_v21 = vsel %vm668_vm3, %v809_v10, 0 }
 0x32b   :  { %1291 = vmatprep.mubr.msk.bf16.mxu0 %vm1512_vm1, %v1511_v17  ;;  %1301 = vmatprep.subr.bf16.mxu0 %v1511_v17 }
 0x32c   :  { %1285 = vmatprep.mubr.msk.bf16.mxu1 %vm1512_vm1, %v1511_v17  ;;  %1295 = vmatprep.subr.bf16.mxu1 %v1511_v17 }
 0x367   :  { %v275_v22 = vpop.f32.mrf.mxu0 }
 0x368   :  { %v576_v23 = vmul.f32 0.35355338, %v275_v22 }
 0x369   :  { %v1245_v24 = vpop.f32.mrf.mxu0 }
 0x36a   :  { %v226_v25 = vpop.f32.mrf.mxu1  ;;  %v586_v26 = vsel %vm185_vm2, %v576_v23, -inf }
 0x36b   :  { %v575_v27 = vmul.f32 0.35355338, %v226_v25  ;;  %587 = vmax.xlane.f32.xlu0 %v586_v26  ;;  %v278_v29 = vpop.f32.mrf.mxu0 }
 0x36c   :  { %v1239_v31 = vpop.f32.mrf.mxu1 }
 0x36d   :  { %v1246_v32 = vpop.f32.mrf.mxu0  ;;  %v583_v33 = vsel %vm185_vm2, %v575_v27, -inf }
 0x36e   :  { %v229_v34 = vpop.f32.mrf.mxu1  ;;  %584 = vmax.xlane.f32.xlu1 %v583_v33 }
 0x370   :  { %v1240_v35 = vpop.f32.mrf.mxu1 }
 0x37f   :  { %856 = vrot.lane.b32.xlu1 %v1597_v62, %s1517_s8 }
 0x3d9   :  { %v324_v36 = vpop.f32.mrf.mxu1  ;;  %v373_v37 = vpop.f32.mrf.mxu0 }
 0x3da   :  { %v1666_v38 = vmul.f32 0.35355338, %v324_v36  ;;  %v1668_v41 = vmul.f32 0.35355338, %v373_v37 }
 0x3db   :  { %v1251_v39 = vpop.f32.mrf.mxu1  ;;  %v1257_v40 = vpop.f32.mrf.mxu0 }
 0x3dc   :  { %v589_v42 = vsel %vm185_vm2, %v1666_v38, -inf  ;;  %v592_v47 = vsel %vm185_vm2, %v1668_v41, -inf }
 0x3dd   :  { %v327_v43 = vpop.f32.mrf.mxu1  ;;  %590 = vmax.xlane.f32.xlu0 %v589_v42  ;;  %v376_v44 = vpop.f32.mrf.mxu0 }
 0x3df   :  { %v1252_v45 = vpop.f32.mrf.mxu1  ;;  %v1258_v46 = vpop.f32.mrf.mxu0 }
 0x3e1   :  { %v422_v48 = vpop.f32.mrf.mxu1  ;;  %593 = vmax.xlane.f32.xlu0 %v592_v47  ;;  %v471_v49 = vpop.f32.mrf.mxu0 }
 0x3e2   :  { %v1674_v50 = vmul.f32 0.35355338, %v422_v48  ;;  %v1676_v51 = vmul.f32 0.35355338, %v471_v49 }
 0x3e3   :  { %v1263_v52 = vpop.f32.mrf.mxu1  ;;  %v1269_v53 = vpop.f32.mrf.mxu0 }
 0x3e4   :  { %v595_v54 = vsel %vm185_vm2, %v1674_v50, -inf  ;;  %v598_v55 = vsel %vm185_vm2, %v1676_v51, -inf }
 0x3e5   :  { %596 = vmax.xlane.f32.xlu1 %v595_v54  ;;  %v425_v56 = vpop.f32.mrf.mxu1  ;;  %599 = vmax.xlane.f32.xlu0 %v598_v55  ;;  %v474_v57 = vpop.f32.mrf.mxu0 }
 0x3e7   :  { %v1264_v58 = vpop.f32.mrf.mxu1  ;;  %v1270_v59 = vpop.f32.mrf.mxu0 }
 0x3e9   :  { %v520_v60 = vpop.f32.mrf.mxu1  ;;  %v569_v62 = vpop.f32.mrf.mxu0 }
 0x3ea   :  { %v581_v63 = vmul.f32 0.35355338, %v520_v60 }
 0x3eb   :  { %v1275_v0 = vpop.f32.mrf.mxu1  ;;  %v1281_v1 = vpop.f32.mrf.mxu0 }
 0x3ec   :  { %v601_v5 = vsel %vm185_vm2, %v581_v63, -inf }
 0x3ed   :  { %602 = vmax.xlane.f32.xlu1 %v601_v5  ;;  %v523_v6 = vpop.f32.mrf.mxu1  ;;  %v572_v7 = vpop.f32.mrf.mxu0 }
 0x3ef   :  { %v1276_v8 = vpop.f32.mrf.mxu1  ;;  %v1282_v9 = vpop.f32.mrf.mxu0 }
 0x3f4   :  { %v588_v11 = vpop.xlane.xlu0 %587 }
 0x3f5   :  { %v608_v12 = vsub.f32 %v576_v23, %v588_v11 }
 0x3f7   :  { %v617_v13 = vmul.f32 1.442695, %v608_v12  ;;  %v585_v14 = vpop.xlane.xlu1 %584 }
 0x3f8   :  { %v607_v15 = vsub.f32 %v575_v27, %v585_v14 }
 0x3f9   :  { %1388 = vpow2.f32 %v617_v13 }
 0x3fa   :  { %v615_v16 = vmul.f32 1.442695, %v607_v15 }
 0x3fb   :  { %904 = vrot.lane.b32.xlu0 %v1595_v61, %s1517_s8  ;;  %v766_v61 = vsel %vm668_vm3, %v761_v2, 0  ;;  %v857_v27 = vpop.permute.xlu1 %856 }
 0x3fc   :  { %1390 = vpow2.f32 %v615_v16 }
 0x3fe   :  { %952 = vrot.lane.b32.xlu1 %v1607_v4, %s1517_s8  ;;  %v1705_v4 = vmul.f32 0.35355338, %v569_v62 }
 0x400   :  { %v604_v23 = vsel %vm185_vm2, %v1705_v4, -inf }
 0x406   :  { %v1687_v18 = vpop.eup %1388 }
 0x407   :  { %v656_v19 = vpack.c.bf16 %v1687_v18, %v1687_v18  ;;  %v634_v9 = vsel %vm185_vm2, %v1687_v18, 0.0 }
 0x409   :  { %v1691_v20 = vpop.eup %1390  ;;  %1292 = vmatmul.mubr.msk.bf16.vlgmr.msra.gmra.mxu0 %vm185_vm2, %v656_v19 }
 0x40a   :  { %1302 = vmatpush3.bf16.msra.mxu0 %v814_v21  ;;  %v655_v22 = vpack.c.bf16 %v1691_v20, %v1691_v20  ;;  %1303 = vmatprep.mubr.msk.bf16.mxu0 %vm1512_vm1, %v1511_v17  ;;  %v631_v62 = vsel %vm185_vm2, %v1691_v20, 0.0 }
 0x40b   :  { %1313 = vmatprep.subr.bf16.mxu0 %v1511_v17 }
 0x40c   :  { %1286 = vmatmul.mubr.msk.bf16.vlgmr.msra.gmra.mxu1 %vm185_vm2, %v655_v22 }
 0x40d   :  { %1296 = vmatpush3.bf16.msra.mxu1 %v766_v61  ;;  %1297 = vmatprep.mubr.msk.bf16.mxu1 %vm1512_vm1, %v1511_v17 }
 0x40e   :  { %1307 = vmatprep.subr.bf16.mxu1 %v1511_v17 }
 0x41a   :  { %605 = vmax.xlane.f32.xlu0 %v604_v23 }
 0x430   :  { %1000 = vrot.lane.b32.xlu0 %v1605_v3, %s1517_s8 }
 0x466   :  { %v591_v24 = vpop.xlane.xlu0 %590 }
 0x467   :  { %v609_v25 = vsub.f32 %v1666_v38, %v591_v24 }
 0x469   :  { %v619_v26 = vmul.f32 1.442695, %v609_v25 }
 0x46a   :  { %v594_v29 = vpop.xlane.xlu0 %593 }
 0x46b   :  { %1392 = vpow2.f32 %v619_v26  ;;  %v610_v31 = vsub.f32 %v1668_v41, %v594_v29  ;;  %v862_v41 = vsel %vm668_vm3, %v857_v27, 0 }
 0x46d   :  { %v621_v32 = vmul.f32 1.442695, %v610_v31 }
 0x46e   :  { %v597_v33 = vpop.xlane.xlu1 %596  ;;  %v600_v34 = vpop.xlane.xlu0 %599 }
 0x46f   :  { %1394 = vpow2.f32 %v621_v32  ;;  %v611_v35 = vsub.f32 %v1674_v50, %v597_v33  ;;  %v612_v36 = vsub.f32 %v1676_v51, %v600_v34  ;;  %v1099_v33 = vld [vmem:[#allocation7 + $0x10] sm:$0xff]  ;;  %v1100_v34 = vld [vmem:[#allocation7 + $0x18] sm:$0xff] }
 0x471   :  { %v623_v37 = vmul.f32 1.442695, %v611_v35  ;;  %v625_v39 = vmul.f32 1.442695, %v612_v36  ;;  %v1102_v36 = vpack.c.bf16 %v1100_v34, %v1099_v33 }
 0x472   :  { %v905_v46 = vpop.permute.xlu0 %904 }
 0x473   :  { %1396 = vpow2.f32 %v623_v37  ;;  %v910_v49 = vsel %vm668_vm3, %v905_v46, 0 }
 0x474   :  { %1398 = vpow2.f32 %v625_v39 }
 0x476   :  { %v603_v3 = vpop.xlane.xlu1 %602 }
 0x477   :  { %v613_v38 = vsub.f32 %v581_v63, %v603_v3 }
 0x478   :  { %v1393_v40 = vpop.eup %1392 }
 0x479   :  { %v627_v42 = vmul.f32 1.442695, %v613_v38  ;;  %v637_v43 = vsel %vm185_vm2, %v1393_v40, 0.0  ;;  %v657_v44 = vpack.c.bf16 %v1393_v40, %v1393_v40 }
 0x47a   :  { %638 = vadd.xlane.f32.xlu1 %v637_v43  ;;  %v953_v51 = vpop.permute.xlu1 %952 }
 0x47b   :  { %1400 = vpow2.f32 %v627_v42  ;;  %1298 = vmatmul.mubr.msk.bf16.vlgmr.msra.gmra.mxu1 %vm185_vm2, %v657_v44  ;;  %v958_v55 = vsel %vm668_vm3, %v953_v51, 0 }
 0x47c   :  { %v1395_v45 = vpop.eup %1394  ;;  %1308 = vmatpush3.bf16.msra.mxu1 %v862_v41  ;;  %1309 = vmatprep.mubr.msk.bf16.mxu1 %vm1512_vm1, %v1511_v17 }
 0x47d   :  { %v640_v47 = vsel %vm185_vm2, %v1395_v45, 0.0  ;;  %v658_v48 = vpack.c.bf16 %v1395_v45, %v1395_v45  ;;  %1319 = vmatprep.subr.bf16.mxu1 %v1511_v17 }
 0x47e   :  { %641 = vadd.xlane.f32.xlu0 %v640_v47 }
 0x47f   :  { %1304 = vmatmul.mubr.msk.bf16.vlgmr.msra.gmra.mxu0 %vm185_vm2, %v658_v48 }
 0x480   :  { %v1397_v50 = vpop.eup %1396  ;;  %1314 = vmatpush3.bf16.msra.mxu0 %v910_v49  ;;  %1315 = vmatprep.mubr.msk.bf16.mxu0 %vm1512_vm1, %v1511_v17 }
 0x481   :  { %v643_v52 = vsel %vm185_vm2, %v1397_v50, 0.0  ;;  %v659_v53 = vpack.c.bf16 %v1397_v50, %v1397_v50  ;;  %1325 = vmatprep.subr.bf16.mxu0 %v1511_v17  ;;  %v1399_v54 = vpop.eup %1398 }
 0x482   :  { %644 = vadd.xlane.f32.xlu0 %v643_v52  ;;  %v646_v56 = vsel %vm185_vm2, %v1399_v54, 0.0  ;;  %v660_v57 = vpack.c.bf16 %v1399_v54, %v1399_v54 }
 0x483   :  { %1310 = vmatmul.mubr.msk.bf16.vlgmr.msra.gmra.mxu1 %vm185_vm2, %v659_v53 }
 0x484   :  { %1320 = vmatpush3.bf16.msra.mxu1 %v958_v55  ;;  %1321 = vmatprep.mubr.msk.bf16.mxu1 %vm1512_vm1, %v1511_v17 }
 0x485   :  { %1331 = vmatprep.subr.bf16.mxu1 %v1511_v17 }
 0x486   :  { %647 = vadd.xlane.f32.xlu0 %v646_v56 }
 0x487   :  { %1316 = vmatmul.mubr.msk.bf16.vlgmr.msra.gmra.mxu0 %vm185_vm2, %v660_v57  ;;  %v1098_v57 = vld [vmem:[#allocation7 + $0x8] sm:$0xff] }
 0x488   :  { %v1401_v58 = vpop.eup %1400  ;;  %1327 = vmatprep.mubr.msk.bf16.mxu0 %vm1512_vm1, %v1511_v17 }
 0x489   :  { %v649_v59 = vsel %vm185_vm2, %v1401_v58, 0.0  ;;  %v661_v60 = vpack.c.bf16 %v1401_v58, %v1401_v58 }
 0x48a   :  { %650 = vadd.xlane.f32.xlu1 %v649_v59 }
 0x48b   :  { %1322 = vmatmul.mubr.msk.bf16.vlgmr.msra.gmra.mxu1 %vm185_vm2, %v661_v60 }
 0x48c   :  { %1335 = vmatprep.mubr.msk.bf16.mxu1 %vm1512_vm1, %v1511_v17  ;;  %1332 = vmatpush3.bf16.msra.mxu1 %v1102_v36 }
 0x48d   :  { %1333 = vmatprep.subr.bf16.mxu1 %v1511_v17  ;;  %v1097_v17 = vld [vmem:[#allocation7] sm:$0xff] }
 0x48e   :  { %632 = vadd.xlane.f32.xlu1 %v631_v62  ;;  %v1101_v58 = vpack.c.bf16 %v1098_v57, %v1097_v17 }
 0x490   :  { %1334 = vmatpush3.bf16.msra.mxu1 %v1101_v58 }
 0x4a3   :  { %v606_v63 = vpop.xlane.xlu0 %605 }
 0x4a4   :  { %v614_v0 = vsub.f32 %v1705_v4, %v606_v63 }
 0x4a6   :  { %v629_v1 = vmul.f32 1.442695, %v614_v0 }
 0x4a7   :  { %v1001_v2 = vpop.permute.xlu0 %1000 }
 0x4a8   :  { %1402 = vpow2.f32 %v629_v1  ;;  %v1006_v5 = vsel %vm668_vm3, %v1001_v2, 0 }
 0x4a9   :  { %1326 = vmatpush3.bf16.msra.mxu0 %v1006_v5 }
 0x4b5   :  { %v1403_v6 = vpop.eup %1402 }
 0x4b6   :  { %v652_v7 = vsel %vm185_vm2, %v1403_v6, 0.0  ;;  %v662_v8 = vpack.c.bf16 %v1403_v6, %v1403_v6 }
 0x4b7   :  { %653 = vadd.xlane.f32.xlu0 %v652_v7 }
 0x4b8   :  { %1328 = vmatmul.mubr.msk.bf16.vlgmr.msra.gmra.mxu0 %vm185_vm2, %v662_v8 }
 0x4bb   :  { %635 = vadd.xlane.f32.xlu0 %v634_v9 }
 0x4c9   :  { %v1749_v10 = vpop.f32.mrf.mxu0 }
 0x4cb   :  { %v1293_v11 = vpop.f32.mrf.mxu0 }
 0x4cc   :  { %v1751_v12 = vpop.f32.mrf.mxu1 }
 0x4cd   :  { %v757_v13 = vpop.f32.mrf.mxu0 }
 0x4ce   :  { %v1287_v14 = vpop.f32.mrf.mxu1 }
 0x4cf   :  { %v1294_v15 = vpop.f32.mrf.mxu0 }
 0x4d0   :  { %v709_v16 = vpop.f32.mrf.mxu1 }
 0x4d2   :  { %v1288_v19 = vpop.f32.mrf.mxu1 }
 0x503   :  { %v639_v21 = vpop.xlane.xlu1 %638 }
 0x504   :  { %1404 = vrcp.f32 %v639_v21 }
 0x507   :  { %v642_v20 = vpop.xlane.xlu0 %641 }
 0x508   :  { %1406 = vrcp.f32 %v642_v20 }
 0x50b   :  { %v645_v22 = vpop.xlane.xlu0 %644 }
 0x50c   :  { %1408 = vrcp.f32 %v645_v22 }
 0x50f   :  { %v648_v61 = vpop.xlane.xlu0 %647 }
 0x510   :  { %1410 = vrcp.f32 %v648_v61 }
 0x511   :  { %v1405_v23 = vpop.eup %1404 }
 0x513   :  { %v651_v55 = vpop.xlane.xlu1 %650 }
 0x514   :  { %1412 = vrcp.f32 %v651_v55 }
 0x515   :  { %v1407_v24 = vpop.eup %1406 }
 0x517   :  { %v633_v7 = vpop.xlane.xlu1 %632 }
 0x519   :  { %v1409_v40 = vpop.eup %1408 }
 0x51d   :  { %v1411_v42 = vpop.eup %1410 }
 0x521   :  { %v1413_v59 = vpop.eup %1412 }
 0x53b   :  { %v802_v18 = vpop.f32.mrf.mxu1 }
 0x53c   :  { %v1058_v27 = vmul.f32 %v1405_v23, %v802_v18 }
 0x53d   :  { %v1299_v4 = vpop.f32.mrf.mxu1 }
 0x53f   :  { %v805_v25 = vpop.f32.mrf.mxu1  ;;  %v850_v26 = vpop.f32.mrf.mxu0 }
 0x540   :  { %v1059_v29 = vmul.f32 %v1407_v24, %v850_v26  ;;  %v654_v56 = vpop.xlane.xlu0 %653 }
 0x541   :  { %v1300_v31 = vpop.f32.mrf.mxu1  ;;  %v1305_v32 = vpop.f32.mrf.mxu0  ;;  %1414 = vrcp.f32 %v654_v56 }
 0x542   :  { %v1369_v35 = vpack.i.bf16 %v1059_v29, %v1058_v27  ;;  %1416 = vrcp.f32 %v633_v7 }
 0x543   :  { %v853_v37 = vpop.f32.mrf.mxu0  ;;  %v898_v39 = vpop.f32.mrf.mxu1 }
 0x544   :  { %1370 = vrot.lane.b32.xlu1 %v1369_v35, %s1509_s21  ;;  %v1060_v41 = vmul.f32 %v1409_v40, %v898_v39  ;;  %v636_v8 = vpop.xlane.xlu0 %635 }
 0x545   :  { %v1306_v3 = vpop.f32.mrf.mxu0  ;;  %v1311_v38 = vpop.f32.mrf.mxu1  ;;  %1418 = vrcp.f32 %v636_v8 }
 0x547   :  { %v901_v43 = vpop.f32.mrf.mxu1  ;;  %v946_v44 = vpop.f32.mrf.mxu0 }
 0x548   :  { %v1061_v45 = vmul.f32 %v1411_v42, %v946_v44 }
 0x549   :  { %v1312_v46 = vpop.f32.mrf.mxu1  ;;  %v1317_v47 = vpop.f32.mrf.mxu0 }
 0x54a   :  { %v1374_v48 = vpack.i.bf16 %v1061_v45, %v1060_v41 }
 0x54b   :  { %v949_v49 = vpop.f32.mrf.mxu0  ;;  %v994_v50 = vpop.f32.mrf.mxu1 }
 0x54c   :  { %1375 = vrot.lane.b32.xlu0 %v1374_v48, %s1518_s9  ;;  %v1062_v63 = vmul.f32 %v1413_v59, %v994_v50 }
 0x54d   :  { %v1318_v51 = vpop.f32.mrf.mxu0  ;;  %v1323_v52 = vpop.f32.mrf.mxu1 }
 0x54e   :  { %v1415_v60 = vpop.eup %1414 }
 0x54f   :  { %v997_v53 = vpop.f32.mrf.mxu1  ;;  %v1417_v11 = vpop.eup %1416 }
 0x550   :  { %v1056_v21 = vmul.f32 %v1417_v11, %v1751_v12  ;;  %v1105_v12 = vsub.s32 2, %v1576_v28 }
 0x551   :  { %v1324_v54 = vpop.f32.mrf.mxu1 }
 0x552   :  { %v1419_v14 = vpop.eup %1418 }
 0x553   :  { %v1057_v22 = vmul.f32 %v1419_v14, %v1749_v10  ;;  %v1106_v10 = vrot.slane %v1582_v30, %v1105_v12 }
 0x578   :  { %v1042_v62 = vpop.f32.mrf.mxu0 }
 0x579   :  { %v1063_v0 = vmul.f32 %v1415_v60, %v1042_v62 }
 0x57a   :  { %v1329_v1 = vpop.f32.mrf.mxu0 }
 0x57b   :  { %v1379_v2 = vpack.i.bf16 %v1063_v0, %v1062_v63 }
 0x57c   :  { %v1045_v5 = vpop.f32.mrf.mxu0 }
 0x57d   :  { %1380 = vrot.lane.b32.xlu1 %v1379_v2, %s1519_s10 }
 0x57e   :  { %v1330_v6 = vpop.f32.mrf.mxu0 }
 0x5b6   :  { %v1371_v9 = vpop.permute.xlu1 %1370 }
 0x5b7   :  { %v1373_v15 = vunpack.i.h.bf16 %v1371_v9  ;;  %v1372_v16 = vunpack.i.l.bf16 %v1371_v9 }
 0x5b9   :  { %v1089_v18 = vsel %vm185_vm2, %v1057_v22, %v1373_v15  ;;  %v1088_v4 = vsel %vm185_vm2, %v1056_v21, %v1372_v16 }
 0x5be   :  { %v1376_v13 = vpop.permute.xlu0 %1375 }
 0x5bf   :  { %v1378_v19 = vunpack.i.h.bf16 %v1376_v13  ;;  %v1377_v20 = vunpack.i.l.bf16 %v1376_v13 }
 0x5c1   :  { %v1092_v25 = vsel %vm1090_vm4, %v1089_v18, %v1378_v19  ;;  %v1091_v26 = vsel %vm1090_vm4, %v1088_v4, %v1377_v20 }
 0x5ef   :  { %v1381_v61 = vpop.permute.xlu1 %1380 }
 0x5f0   :  { %v1383_v23 = vunpack.i.h.bf16 %v1381_v61  ;;  %v1382_v24 = vunpack.i.l.bf16 %v1381_v61 }
 0x5f2   :  { %v1095_v27 = vsel %vm1093_vm5, %v1092_v25, %v1383_v23  ;;  %v1094_v29 = vsel %vm1093_vm5, %v1091_v26, %v1382_v24 }
 0x5f3   :  { %v1096_v31 = vpack.c.bf16 %v1095_v27, %v1094_v29 }
 0x5f5   :  { %1336 = vmatmul.mubr.msk.bf16.vlgmr.msra.gmra.mxu1 %vm63_vm0, %v1096_v31 }
 0x6b5   :  { %v1144_v32 = vpop.f32.mrf.mxu1 }
 0x6b6   :  { %v1145_v33 = vadd.f32 %v1144_v32, %v1106_v10 }
 0x6b7   :  { %v1337_v34 = vpop.f32.mrf.mxu1 }
 0x6b8   :  { %1151 = vst.msk [vmem:[#allocation8] sm:$0xff] %vm63_vm0, %v1145_v33 }
 0x6b9   :  { %v1147_v35 = vpop.f32.mrf.mxu1 }
 0x6ba   :  { %v1148_v36 = vadd.f32 %v1147_v35, %v1106_v10 }
 0x6bb   :  { %v1338_v37 = vpop.f32.mrf.mxu1 }
 0x6bc   :  { %1152 = vst.msk [vmem:[#allocation8 + $0x8] sm:$0xff] %vm63_vm0, %v1148_v36 }
 0x6bd   :  { %1491 = shalt.err (!%p1488_p5)
}
 0x6be   :  { %1164 = dma.vmem_to_hbm [thread:$0]  %s1159_s12, 256, %s1774_s4, [#allocation4], %s1508_s20, %s1508_s20, %s1509_s21  }
 0x6bf   :  { %1504 = dma.done.wait [#allocation4], 256  }
 0x6c0   :  { %1505 = vsyncadd [#allocation4], 4294967040 }
 0x6c1   :  { %1168 = vsyncpa [#allocation3], 1 }
 0x6c2   :  { %1169 = vsyncpa [#allocation6], 1 }
 0x6c3   :  { %1170 = vsyncpa [#allocation4], 1 }

</bundles_post_ra>
